<compile_context>
chip_gen: v7x
topology: tpu7x:2x2x1
jax: 0.10.0
libtpu: 0.0.40
codegen_flags: <defaults>
</compile_context>

<pallas_src>
import jax
import jax.numpy as jnp
from jax.experimental import pallas as pl
from jax.experimental.pallas import tpu as pltpu

LANE = 128


def _round_up(x, m):
    return (x + m - 1) // m * m


def _cdiv(a, b):
    return -(-a // b)


# ----------------------------------------------------------------------------
# Kernel (transposed):  out.T = W3.T relu(W2.T relu(W1.T x.T + b1) + b2) + b3
# All refs are full (zero-padded) tiles; batch is the lane dimension.
# ----------------------------------------------------------------------------
def dueling_net_kernel(xt_ref, w1_ref, w2_ref, w3_ref,
                       b1_ref, b2_ref, b3_ref, out_ref):
    xt = xt_ref[...]                                              # (n_in_p, tb) bf16

    h1 = jnp.dot(w1_ref[...], xt, preferred_element_type=jnp.float32)
    h1 = jnp.maximum(h1 + b1_ref[...], 0.0).astype(jnp.bfloat16)  # (n_mid_p, tb)

    h2 = jnp.dot(w2_ref[...], h1, preferred_element_type=jnp.float32)
    h2 = jnp.maximum(h2 + b2_ref[...], 0.0)                       # stays f32

    # Head (with folded dueling mean-centering) kept in f32 for exactness.
    y = jnp.dot(w3_ref[...], h2, preferred_element_type=jnp.float32)
    out_ref[...] = y + b3_ref[...]                                # (n_out_p, tb)


# ----------------------------------------------------------------------------
# Host-side parameter preparation: fold the dueling heads, transpose, pad.
# ----------------------------------------------------------------------------
def pack_params(params, n_in, n_mid, n_out):
    w1, b1, w2, b2, wa, ba, wv, bv = params

    # out = val + adv - mean(adv)  ==  adv @ (I - 11^T/n) + val @ 1^T
    center = (jnp.eye(n_out, dtype=jnp.float32)
              - jnp.full((n_out, n_out), 1.0 / n_out, jnp.float32))
    ones_row = jnp.ones((1, n_out), jnp.float32)
    w3 = wa @ center + wv @ ones_row          # (n_mid, n_out)
    b3 = ba @ center + bv @ ones_row          # (1, n_out)

    n_in_p = _round_up(n_in, 8)
    n_mid_p = _round_up(n_mid, 8)
    n_out_p = _round_up(n_out, 8)

    def pad2(a, rows, cols):
        z = jnp.zeros((rows, cols), jnp.float32)
        return z.at[:a.shape[0], :a.shape[1]].set(a.astype(jnp.float32))

    w1t = pad2(w1.T, n_mid_p, n_in_p).astype(jnp.bfloat16)
    w2t = pad2(w2.T, n_mid_p, n_mid_p).astype(jnp.bfloat16)
    w3t = pad2(w3.T, n_out_p, n_mid_p)        # f32: keeps mean-centering exact
    b1c = pad2(b1.T, n_mid_p, 1)
    b2c = pad2(b2.T, n_mid_p, 1)
    b3c = pad2(b3.T, n_out_p, 1)

    meta = dict(n_in=n_in, n_mid=n_mid, n_out=n_out,
                n_in_p=n_in_p, n_mid_p=n_mid_p, n_out_p=n_out_p)
    return (w1t, w2t, w3t, b1c, b2c, b3c, meta)


# ----------------------------------------------------------------------------
# Batch tiling: big lane-aligned tiles, >=2 blocks for large B (v7x dual-TC),
# minimal padding for small B.
# ----------------------------------------------------------------------------
def _pick_batch_tiling(batch, block_b):
    b8 = _round_up(batch, 8)
    if b8 <= 256:
        return b8, b8                              # one block, <=7 padded rows
    nb = max(2, _cdiv(b8, block_b))                # at least 2 grid blocks
    tb = _round_up(_cdiv(b8, nb), LANE)            # lane-aligned (unmasked vst)
    return tb, nb * tb


# ----------------------------------------------------------------------------
# Wrapper: batch-tiled pallas_call on the transposed layout.
# ----------------------------------------------------------------------------
def dueling_net_forward(x, packed, *, block_b=1024):
    w1t, w2t, w3t, b1c, b2c, b3c, meta = packed
    n_in, n_out = meta["n_in"], meta["n_out"]
    n_in_p, n_mid_p, n_out_p = meta["n_in_p"], meta["n_mid_p"], meta["n_out_p"]

    batch = x.shape[0]
    tb, b_pad = _pick_batch_tiling(batch, block_b)

    # Layout plumbing on the host: batch -> lanes, zero-pad, pre-cast to bf16.
    xt = jnp.zeros((n_in_p, b_pad), jnp.bfloat16)
    xt = xt.at[:n_in, :batch].set(x.T.astype(jnp.bfloat16))

    grid = (b_pad // tb,)
    rep = lambda shape: pl.BlockSpec(shape, lambda i: (0, 0))   # fetched once

    flops = 2 * b_pad * (n_in_p * n_mid_p + n_mid_p * n_mid_p + n_mid_p * n_out_p)
    bytes_accessed = (xt.size * 2
                      + w1t.size * 2 + w2t.size * 2 + w3t.size * 4
                      + (b1c.size + b2c.size + b3c.size) * 4
                      + b_pad * n_out_p * 4)

    out_t = pl.pallas_call(
        dueling_net_kernel,
        out_shape=jax.ShapeDtypeStruct((n_out_p, b_pad), jnp.float32),
        grid_spec=pltpu.PrefetchScalarGridSpec(
            num_scalar_prefetch=0,
            grid=grid,
            in_specs=[
                pl.BlockSpec((n_in_p, tb), lambda i: (0, i)),    # batch tile
                rep(w1t.shape), rep(w2t.shape), rep(w3t.shape),  # replicated
                rep(b1c.shape), rep(b2c.shape), rep(b3c.shape),
            ],
            out_specs=pl.BlockSpec((n_out_p, tb), lambda i: (0, i)),
        ),
        compiler_params=pltpu.CompilerParams(
            dimension_semantics=("parallel",)),                  # v7x: 2 TCs
        cost_estimate=pl.CostEstimate(flops=flops, transcendentals=0,
                                      bytes_accessed=bytes_accessed),
    )(xt, w1t, w2t, w3t, b1c, b2c, b3c)

    # Drop sublane/batch padding and transpose back to (batch, n_out).
    return out_t[:n_out, :batch].T


# ----------------------------------------------------------------------------
# Reference / demo
# ----------------------------------------------------------------------------
def init_params(key, n_in, n_mid, n_out):
    ks = jax.random.split(key, 8)
    scale = 0.1
    w1 = scale * jax.random.normal(ks[0], (n_in, n_mid), jnp.float32)
    b1 = scale * jax.random.normal(ks[1], (1, n_mid), jnp.float32)
    w2 = scale * jax.random.normal(ks[2], (n_mid, n_mid), jnp.float32)
    b2 = scale * jax.random.normal(ks[3], (1, n_mid), jnp.float32)
    wa = scale * jax.random.normal(ks[4], (n_mid, n_out), jnp.float32)
    ba = scale * jax.random.normal(ks[5], (1, n_out), jnp.float32)
    wv = scale * jax.random.normal(ks[6], (n_mid, 1), jnp.float32)
    bv = scale * jax.random.normal(ks[7], (1, 1), jnp.float32)
    return (w1, b1, w2, b2, wa, ba, wv, bv)


def reference_forward(x, params):
    w1, b1, w2, b2, wa, ba, wv, bv = params
    h1 = jnp.maximum(x @ w1 + b1, 0.0)
    h2 = jnp.maximum(h1 @ w2 + b2, 0.0)
    adv = h2 @ wa + ba
    val = h2 @ wv + bv
    return val + adv - jnp.mean(adv, axis=1, keepdims=True)


if __name__ == "__main__":
    key = jax.random.PRNGKey(0)
    k_x, k_p = jax.random.split(key)

    B, n_in, n_mid, n_out = 8, 4, 32, 2            # small Dueling-DQN head shapes
    x = jax.random.normal(k_x, (B, n_in), jnp.float32)
    params = init_params(k_p, n_in, n_mid, n_out)

    packed = pack_params(params, n_in, n_mid, n_out)
    out = dueling_net_forward(x, packed)
    out = jax.block_until_ready(out)

    ref = reference_forward(x, params)
    assert out.shape == (B, n_out)
    # bf16 hidden layers -> loosened tolerance vs. the f32 reference; the
    # dueling head / mean-centering itself is computed in f32.
    assert jnp.allclose(out, ref, atol=2e-2, rtol=2e-2), "mismatch vs reference"

    print("KERNEL_OK")
</pallas_src>

<mosaic_0001>
module attributes {stable_mosaic.version = 11 : i64} {
  func.func @dueling_net_kernel(%arg0: i32, %arg1: memref<8x8xbf16, #tpu.memory_space<vmem>>, %arg2: memref<32x8xbf16, #tpu.memory_space<vmem>>, %arg3: memref<32x32xbf16, #tpu.memory_space<vmem>>, %arg4: memref<8x32xf32, #tpu.memory_space<vmem>>, %arg5: memref<32x1xf32, #tpu.memory_space<vmem>>, %arg6: memref<32x1xf32, #tpu.memory_space<vmem>>, %arg7: memref<8x1xf32, #tpu.memory_space<vmem>>, %arg8: memref<8x8xf32, #tpu.memory_space<vmem>>) attributes {dimension_semantics = [#tpu.dimension_semantics<parallel>], iteration_bounds = array<i64: 1>, scalar_prefetch = 0 : i64, scratch_operands = 0 : i64, tpu.core_type = #tpu.core_type<tc>, window_params = [{transform_indices = @transform_0, window_bounds = array<i64: 8, 8>}, {pipeline_mode = #tpu.pipeline_mode<synchronous>, transform_indices = @transform_1, window_bounds = array<i64: 32, 8>}, {pipeline_mode = #tpu.pipeline_mode<synchronous>, transform_indices = @transform_2, window_bounds = array<i64: 32, 32>}, {pipeline_mode = #tpu.pipeline_mode<synchronous>, transform_indices = @transform_3, window_bounds = array<i64: 8, 32>}, {pipeline_mode = #tpu.pipeline_mode<synchronous>, transform_indices = @transform_4, window_bounds = array<i64: 32, 1>}, {pipeline_mode = #tpu.pipeline_mode<synchronous>, transform_indices = @transform_5, window_bounds = array<i64: 32, 1>}, {pipeline_mode = #tpu.pipeline_mode<synchronous>, transform_indices = @transform_6, window_bounds = array<i64: 8, 1>}, {transform_indices = @transform_7, window_bounds = array<i64: 8, 8>}]} {
    %c0 = arith.constant 0 : index
    %c0_0 = arith.constant 0 : index
    %0 = vector.load %arg1[%c0, %c0_0] : memref<8x8xbf16, #tpu.memory_space<vmem>>, vector<8x8xbf16>
    %c0_1 = arith.constant 0 : index
    %c0_2 = arith.constant 0 : index
    %1 = vector.load %arg2[%c0_1, %c0_2] : memref<32x8xbf16, #tpu.memory_space<vmem>>, vector<32x8xbf16>
    %cst = arith.constant dense<0.000000e+00> : vector<32x8xf32>
    %2 = tpu.matmul %1, %0, %cst {dimension_numbers = #tpu.dot_dimension_numbers<[1], [0], [0], [1], [0, 0, 1, 1], [], []>} : vector<32x8xbf16>, vector<8x8xbf16>, vector<32x8xf32> -> vector<32x8xf32>
    %c0_3 = arith.constant 0 : index
    %c0_4 = arith.constant 0 : index
    %3 = vector.load %arg5[%c0_3, %c0_4] : memref<32x1xf32, #tpu.memory_space<vmem>>, vector<32x1xf32>
    %4 = vector.broadcast %3 : vector<32x1xf32> to vector<32x8xf32>
    %5 = arith.addf %2, %4 : vector<32x8xf32>
    %cst_5 = arith.constant 0.000000e+00 : f32
    %6 = vector.broadcast %cst_5 : f32 to vector<32x8xf32>
    %7 = arith.maximumf %5, %6 : vector<32x8xf32>
    %8 = arith.truncf %7 : vector<32x8xf32> to vector<32x8xbf16>
    %c0_6 = arith.constant 0 : index
    %c0_7 = arith.constant 0 : index
    %9 = vector.load %arg3[%c0_6, %c0_7] : memref<32x32xbf16, #tpu.memory_space<vmem>>, vector<32x32xbf16>
    %cst_8 = arith.constant dense<0.000000e+00> : vector<32x8xf32>
    %10 = tpu.matmul %9, %8, %cst_8 {dimension_numbers = #tpu.dot_dimension_numbers<[1], [0], [0], [1], [0, 0, 1, 1], [], []>} : vector<32x32xbf16>, vector<32x8xbf16>, vector<32x8xf32> -> vector<32x8xf32>
    %c0_9 = arith.constant 0 : index
    %c0_10 = arith.constant 0 : index
    %11 = vector.load %arg6[%c0_9, %c0_10] : memref<32x1xf32, #tpu.memory_space<vmem>>, vector<32x1xf32>
    %12 = vector.broadcast %11 : vector<32x1xf32> to vector<32x8xf32>
    %13 = arith.addf %10, %12 : vector<32x8xf32>
    %cst_11 = arith.constant 0.000000e+00 : f32
    %14 = vector.broadcast %cst_11 : f32 to vector<32x8xf32>
    %15 = arith.maximumf %13, %14 : vector<32x8xf32>
    %c0_12 = arith.constant 0 : index
    %c0_13 = arith.constant 0 : index
    %16 = vector.load %arg4[%c0_12, %c0_13] : memref<8x32xf32, #tpu.memory_space<vmem>>, vector<8x32xf32>
    %cst_14 = arith.constant dense<0.000000e+00> : vector<8x8xf32>
    %17 = tpu.matmul %16, %15, %cst_14 {dimension_numbers = #tpu.dot_dimension_numbers<[1], [0], [0], [1], [0, 0, 1, 1], [], []>} : vector<8x32xf32>, vector<32x8xf32>, vector<8x8xf32> -> vector<8x8xf32>
    %c0_15 = arith.constant 0 : index
    %c0_16 = arith.constant 0 : index
    %18 = vector.load %arg7[%c0_15, %c0_16] : memref<8x1xf32, #tpu.memory_space<vmem>>, vector<8x1xf32>
    %19 = vector.broadcast %18 : vector<8x1xf32> to vector<8x8xf32>
    %20 = arith.addf %17, %19 : vector<8x8xf32>
    %c0_17 = arith.constant 0 : index
    %c0_18 = arith.constant 0 : index
    %21 = vector.load %arg8[%c0_17, %c0_18] : memref<8x8xf32, #tpu.memory_space<vmem>>, vector<8x8xf32>
    tpu.vector_store %arg8[%c0_17, %c0_18], %20 {strides = array<i32>} : memref<8x8xf32, #tpu.memory_space<vmem>>, vector<8x8xf32>,
    return
  }
  func.func @transform_0(%arg0: i32) -> (i32, i32) {
    %c0_i32 = arith.constant 0 : i32
    %c0_i32_0 = arith.constant 0 : i32
    return %c0_i32, %arg0 : i32, i32
  }
  func.func @transform_1(%arg0: i32) -> (i32, i32) {
    %c0_i32 = arith.constant 0 : i32
    %c0_i32_0 = arith.constant 0 : i32
    %c0_i32_1 = arith.constant 0 : i32
    return %c0_i32, %c0_i32_0 : i32, i32
  }
  func.func @transform_2(%arg0: i32) -> (i32, i32) {
    %c0_i32 = arith.constant 0 : i32
    %c0_i32_0 = arith.constant 0 : i32
    %c0_i32_1 = arith.constant 0 : i32
    return %c0_i32, %c0_i32_0 : i32, i32
  }
  func.func @transform_3(%arg0: i32) -> (i32, i32) {
    %c0_i32 = arith.constant 0 : i32
    %c0_i32_0 = arith.constant 0 : i32
    %c0_i32_1 = arith.constant 0 : i32
    return %c0_i32, %c0_i32_0 : i32, i32
  }
  func.func @transform_4(%arg0: i32) -> (i32, i32) {
    %c0_i32 = arith.constant 0 : i32
    %c0_i32_0 = arith.constant 0 : i32
    %c0_i32_1 = arith.constant 0 : i32
    return %c0_i32, %c0_i32_0 : i32, i32
  }
  func.func @transform_5(%arg0: i32) -> (i32, i32) {
    %c0_i32 = arith.constant 0 : i32
    %c0_i32_0 = arith.constant 0 : i32
    %c0_i32_1 = arith.constant 0 : i32
    return %c0_i32, %c0_i32_0 : i32, i32
  }
  func.func @transform_6(%arg0: i32) -> (i32, i32) {
    %c0_i32 = arith.constant 0 : i32
    %c0_i32_0 = arith.constant 0 : i32
    %c0_i32_1 = arith.constant 0 : i32
    return %c0_i32, %c0_i32_0 : i32, i32
  }
  func.func @transform_7(%arg0: i32) -> (i32, i32) {
    %c0_i32 = arith.constant 0 : i32
    %c0_i32_0 = arith.constant 0 : i32
    return %c0_i32, %arg0 : i32, i32
  }
}

</mosaic_0001>

<bundles_post_ra>
// kernel: tpu_custom_call.1
= control target key start
LH: loop header
LB: loop body
LE: loop exit
PB: predicated region body
PF: predicated region fallthrough
CT: control target
= control target key end

     0   :  { %vm74_vm0 = vcmask 1043456   ;;  %vm67_vm1 = vcmask 64512   ;;  %v414_v5 = vmov 0   ;;  %s522_s0 = inlined_call_operand.vmem [shape: bf16[8,8], index: 0, kind: input, shape index: {}]   ;;  %s523_s1 = inlined_call_operand.vmem [shape: bf16[32,8], index: 1, kind: input, shape index: {}]   ;;  %s524_s2 = inlined_call_operand.vmem [shape: bf16[32,32], index: 2, kind: input, shape index: {}]   ;;  %s525_s3 = inlined_call_operand.vmem [shape: f32[8,32], index: 3, kind: input, shape index: {}]   ;;  %s526_s4 = inlined_call_operand.vmem [shape: f32[32,1], index: 4, kind: input, shape index: {}]   ;;  %s527_s5 = inlined_call_operand.vmem [shape: f32[32,1], index: 5, kind: input, shape index: {}]   ;;  %s528_s6 = inlined_call_operand.vmem [shape: f32[8,1], index: 6, kind: input, shape index: {}]   ;;  %s529_s7 = inlined_call_operand.hbm [shape: f32[8,8], index: 7, kind: output, shape index: {}]  }
   0x1   :  { %v28_v0 = vld [vmem:[%s522_s0] sm:$0xf]  ;;  %v387_v3 = vld [vmem:[%s523_s1 + $0x8] sm:$0xff]   ;;  %384 = vset.pattern.permute.xlu0 %v414_v5  ;;  %385 = vset.pattern.permute.xlu1 %v414_v5  ;;  %v35_v6 = vld [vmem:[%s526_s4 + $0x10] sm:$0xff] }
   0x2   :  { %v386_v1 = vld [vmem:[%s523_s1] sm:$0xff]   ;;  %378 = vmatprep.subr.msk.bf16.mxu0 %vm74_vm0, %v28_v0  ;;  %v76_v2 = vsel %vm74_vm0, %v28_v0, 0  ;;  %49 = vperm.xlu1 %385, %v35_v6   ;;  %v34_v7 = vld [vmem:[%s526_s4 + $0x8] sm:$0xff]  ;;  %v36_v8 = vld [vmem:[%s526_s4 + $0x18] sm:$0xff] }
   0x3   :  { %348 = vmatpush3.bf16.msra.mxu0 %v76_v2  ;;  %349 = vmatprep.mubr.msk.bf16.mxu0 %vm67_vm1, %v386_v1  ;;  %v33_v4 = vld [vmem:[%s526_s4] sm:$0xff] }
   0x4   :  { %39 = vperm.xlu0 %384, %v33_v4  }
   0x6   :  { %350 = vmatmul.mubr.msk.bf16.vlgmr.msra.gmra.mrb[0].mxu0 %vm67_vm1, %v387_v3 }
   0x7   :  { %12 = vsyncpa [#allocation3], 0  ;;  %54 = vperm.xlu1 %385, %v36_v8   ;;  %v137_v9 = vld [vmem:[%s527_s5] sm:$0xff]  ;;  %v138_v10 = vld [vmem:[%s527_s5 + $0x8] sm:$0xff]  ;;  %vm171_vm2 = vcmask 261120   ;;  %v415_v34 = vmov 0.0|0.0  }
   0x8   :  { %44 = vperm.xlu0 %384, %v34_v7   ;;  %v139_v11 = vld [vmem:[%s527_s5 + $0x10] sm:$0xff]  ;;  %v140_v12 = vld [vmem:[%s527_s5 + $0x18] sm:$0xff]  ;;  %v232_v13 = vld [vmem:[%s528_s6] sm:$0xff]  ;;  %372 = vmatprep.subr.bf16.mxu0 %v415_v34  ;;  %vm416_vm3 = vmmov 0   ;;  %v417_v35 = vmov 0.0   ;;  %s418_s25 = smov [#allocation2]  }
   0x9   :  { %v388_v14 = vld [vmem:[%s524_s2] sm:$0xff]   ;;  %v389_v33 = vld [vmem:[%s524_s2 + $0x8] sm:$0xff]   ;;  %369 = vmatprep.mubr.msk.f32.mxu0 %vm416_vm3, %v417_v35  ;;  %s318_s26 = sshll.u32 %s418_s25, 4  ;;  %s319_s26 = int_to_ptr.vmem [resolvable:$true] %s318_s26 }
   0xa   :  { %357 = vmatprep.mubr.msk.bf16.mxu1 %vm171_vm2, %v388_v14  ;;  %v231_v54 = vld [vmem:[%s525_s3] sm:$0xff]  ;;  %s390_s27 = scalar_lea.vmem %s319_s26, 128  ;;  %p395_p1 = scmp.lt.s32.totalorder %s319_s26, %s319_s26 }
   0xb   :  { %148 = vperm.xlu1 %385, %v138_v10   ;;  %p391_p0 = scmp.ne.s32.totalorder %s319_s26, %s390_s27  ;;  %p396_p2 = scmp.lt.s32.totalorder %s390_s27, %s390_s27 }
   0xc   :  { %143 = vperm.xlu0 %384, %v137_v9  }
   0xd   :  { %p397_p3 = por %p396_p2, %p395_p1 }
   0xf   :  { %158 = vperm.xlu1 %385, %v140_v12   ;;  %p398_p4 = pnand %p397_p3, %p391_p0 }
  0x10   :  { %153 = vperm.xlu0 %384, %v139_v11  }
  0x14   :  { %235 = vperm.xlu0 %384, %v232_v13  }
  0x81   :  { %v50_v15 = vpop.permute.xlu1 %49 }
  0x83   :  { %v40_v16 = vpop.permute.xlu0 %39 }
  0x86   :  { %v55_v20 = vpop.permute.xlu1 %54 }
  0x87   :  { %v45_v23 = vpop.permute.xlu0 %44 }
  0x8a   :  { %v149_v37 = vpop.permute.xlu1 %148 }
  0x8b   :  { %v144_v36 = vpop.permute.xlu0 %143 }
  0x8e   :  { %v159_v42 = vpop.permute.xlu1 %158 }
  0x8f   :  { %v154_v38 = vpop.permute.xlu0 %153 }
  0x93   :  { %v236_v55 = vpop.permute.xlu0 %235 }
  0xd9   :  { %v351_v17 = vpop.f32.mrb[0].mxu0 }
  0xda   :  { %v121_v18 = vadd.f32 %v351_v17, %v50_v15  ;;  %v112_v19 = vpop.f32.mrb[1].mxu0 }
  0xdb   :  { %v113_v21 = vadd.f32 %v112_v19, %v40_v16  ;;  %v352_v22 = vpop.f32.mrb[2].mxu0 }
  0xdc   :  { %v124_v24 = vadd.f32 %v352_v22, %v55_v20  ;;  %v115_v25 = vpop.f32.mrb[3].mxu0  ;;  %v129_v27 = vmax.f32 %v121_v18, 0.0 }
  0xdd   :  { %v116_v26 = vadd.f32 %v115_v25, %v45_v23  ;;  %v127_v29 = vmax.f32 %v113_v21, 0.0 }
  0xde   :  { %v130_v28 = vmax.f32 %v124_v24, 0.0 }
  0xdf   :  { %v128_v30 = vmax.f32 %v116_v26, 0.0 }
  0xe0   :  { %v132_v31 = vpack.c.bf16 %v130_v28, %v129_v27 }
  0xe1   :  { %v131_v32 = vpack.c.bf16 %v128_v30, %v127_v29 }
  0xe3   :  { %353 = vmatprep.subr.bf16.mxu1 %v131_v32 }
  0xe4   :  { %354 = vmatpush3.bf16.msra.mxu1 %v131_v32 }
  0xe5   :  { %355 = vmatprep.subr.bf16.mxu1 %v132_v31 }
  0xe8   :  { %356 = vmatpush3.bf16.msra.mxu1 %v132_v31 }
  0xeb   :  { %358 = vmatmul.mubr.msk.bf16.vlgmr.msra.gmra.mrb[0].mxu1 %vm171_vm2, %v389_v33 }
 0x1be   :  { %v359_v39 = vpop.f32.mrb[0].mxu1 }
 0x1bf   :  { %v221_v40 = vadd.f32 %v359_v39, %v154_v38  ;;  %v212_v41 = vpop.f32.mrb[1].mxu1 }
 0x1c0   :  { %v213_v43 = vadd.f32 %v212_v41, %v144_v36  ;;  %v360_v44 = vpop.f32.mrb[2].mxu1 }
 0x1c1   :  { %v224_v45 = vadd.f32 %v360_v44, %v159_v42  ;;  %v215_v46 = vpop.f32.mrb[3].mxu1  ;;  %v229_v48 = vmax.f32 %v221_v40, 0.0 }
 0x1c2   :  { %v216_v47 = vadd.f32 %v215_v46, %v149_v37  ;;  %v227_v50 = vmax.f32 %v213_v43, 0.0 }
 0x1c3   :  { %v230_v49 = vmax.f32 %v224_v45, 0.0 }
 0x1c4   :  { %v228_v51 = vmax.f32 %v216_v47, 0.0 }
 0x1c5   :  { %v376_v52 = vpack.c.bf16 %v230_v49, %v229_v48 }
 0x1c6   :  { %v373_v53 = vpack.c.bf16 %v228_v51, %v227_v50 }
 0x1c8   :  { %374 = vmatpush3.bf16.msra.mxu0 %v373_v53 }
 0x1c9   :  { %375 = vmatprep.subr.bf16.mxu0 %v415_v34 }
 0x1cc   :  { %377 = vmatpush3.bf16.msra.mxu0 %v376_v52 }
 0x1cf   :  { %370 = vmatmul.mubr.msk.f32.vlgmr.msra.gmra.mrb[4].mxu0 %vm171_vm2, %v231_v54 }
 0x2a2   :  { %v307_v56 = vpop.f32.mrb[4].mxu0 }
 0x2a3   :  { %v308_v57 = vadd.f32 %v307_v56, %v236_v55  ;;  %v371_v58 = vpop.f32.mrb[5].mxu0 }
 0x2a5   :  { %311 = vst.msk [vmem:[#allocation2] sm:$0xff] %vm67_vm1, %v308_v57 }
 0x2a6   :  { %401 = shalt.err (!%p398_p4)
}
 0x2a7   :  { %s402_s29 = scalar_lea.hbm %s529_s7, 128 }
 0x2a8   :  { %p403_p5 = scmp.ne.s32.totalorder %s529_s7, %s402_s29  ;;  %p406_p6 = scmp.lt.u32.totalorder %s402_s29, %s529_s7 }
 0x2aa   :  { %p408_p7 = pnand %p406_p6, %p403_p5 }
 0x2ac   :  { %411 = shalt.err (!%p408_p7)
}
 0x2ad   :  { %321 = dma.vmem_to_hbm [thread:$0]  %s319_s26, 128, %s529_s7, [#allocation3]  }
 0x2ae   :  { %412 = dma.done.wait [#allocation3], 128  }
 0x2af   :  { %413 = vsyncadd [#allocation3], 4294967168 }
 0x2b0   :  { %325 = vsyncpa [#allocation3], 1 }

</bundles_post_ra>
